<compile_context>
chip_gen: v6e
topology: v6e:2x2x1
jax: 0.10.0
libtpu: 0.0.40
codegen_flags: <defaults>
</compile_context>

<pallas_src>
import functools

import jax
import jax.numpy as jnp
from jax.experimental import pallas as pl
from jax.experimental.pallas import tpu as pltpu


def _mlp_kernel(x_ref, w1_ref, b1_ref, w2_ref, b2_ref, w3_ref, b3_ref, o_ref):
    # x_ref: (tile_b, 15) f32, natural HBM layout.  Cast to bf16 on the VPU
    # right before the MXU dot (cast is hidden under the x-tile DMA).
    x = x_ref[...].astype(jnp.bfloat16)                       # (T, 15) bf16

    # ---- layer 1 on the MXU, transposed feed: (12,15) . (T,15)^T -> (12,T) ----
    h1 = jax.lax.dot_general(
        w1_ref[...], x,
        dimension_numbers=(((1,), (1,)), ((), ())),           # contract dim 15
        preferred_element_type=jnp.float32)                   # (12, T) f32
    h1 = jnp.maximum(h1 + b1_ref[...], 0.0)                   # bias + ReLU

    # ---- layer 2 on the MXU: (4,12) @ (12,T) -> (4,T) ----
    h2 = jnp.dot(w2_ref[...], h1, preferred_element_type=jnp.float32)
    h2 = jnp.maximum(h2 + b2_ref[...], 0.0)                   # (4, T) f32

    # ---- layer 3 on the MXU: (1,4) @ (4,T) -> (1,T) ----
    h3 = jnp.dot(w3_ref[...], h2, preferred_element_type=jnp.float32)
    h3 = h3 + b3_ref[...]                                     # (1, T) f32

    # ---- sigmoid: numerically stable, single EUP tanh ----
    y = 0.5 * jnp.tanh(0.5 * h3) + 0.5
    o_ref[...] = y.astype(o_ref.dtype)                        # lane-dense store


def _round_up(n, m):
    return ((n + m - 1) // m) * m


@functools.partial(jax.jit, static_argnames=("tile_b",))
def mlp_forward(x, w1, b1, w2, b2, w3, b3, *, tile_b=32768):
    """x: (B, 15) float32.  Params in PyTorch nn.Linear layout:
    w1 (12,15), b1 (12,), w2 (4,12), b2 (4,), w3 (1,4), b3 (1,).
    Returns (B, 1) float32 — sigmoid output."""
    B = x.shape[0]

    # Lane-aligned tile (multiple of 128); cap at ~half the batch so the grid
    # has >=2 steps whenever B > 128 (lets v7x split the batch across both
    # TensorCores; no-op on v5e/v6e).  Padding waste per edge tile is <128 rows.
    cap = max(128, _round_up((B + 1) // 2, 128))
    tb = max(128, min(_round_up(tile_b, 128), cap))
    grid = (pl.cdiv(B, tb),)                                  # partial last block OK

    # Tiny params: W1 in bf16 (layer-1 MXU operand), biases as (out, 1) columns
    # for lane-broadcast, everything else f32 (VPU math stays f32 — v5e safe).
    w1b = w1.astype(jnp.bfloat16)                             # (12, 15)
    b1c = b1.reshape(12, 1).astype(jnp.float32)
    w2c = w2.astype(jnp.float32)                              # (4, 12)
    b2c = b2.reshape(4, 1).astype(jnp.float32)
    w3c = w3.astype(jnp.float32)                              # (1, 4)
    b3c = b3.reshape(1, 1).astype(jnp.float32)

    resident = lambda shape: pl.BlockSpec(shape, lambda i: (0, 0))  # stays in VMEM

    yT = pl.pallas_call(
        _mlp_kernel,
        out_shape=jax.ShapeDtypeStruct((1, B), jnp.float32),
        grid=grid,
        in_specs=[
            pl.BlockSpec((tb, 15), lambda i: (i, 0)),  # x: streamed, natural layout
            resident((12, 15)),                        # W1 (bf16)
            resident((12, 1)),                         # b1
            resident((4, 12)),                         # W2
            resident((4, 1)),                          # b2
            resident((1, 4)),                          # W3
            resident((1, 1)),                          # b3
        ],
        out_specs=pl.BlockSpec((1, tb), lambda i: (0, i)),    # lane-dense output
        compiler_params=pltpu.CompilerParams(
            dimension_semantics=("parallel",)),
    )(x, w1b, b1c, w2c, b2c, w3c, b3c)

    return yT.reshape(B, 1)


def init_params(key):
    """PyTorch nn.Linear default init: uniform(+-1/sqrt(fan_in)), (out,in) weights."""
    def linear(k, fan_in, fan_out):
        kw, kb = jax.random.split(k)
        bound = 1.0 / jnp.sqrt(float(fan_in))
        w = jax.random.uniform(kw, (fan_out, fan_in), jnp.float32, -bound, bound)
        b = jax.random.uniform(kb, (fan_out,), jnp.float32, -bound, bound)
        return w, b

    k1, k2, k3 = jax.random.split(key, 3)
    w1, b1 = linear(k1, 15, 12)
    w2, b2 = linear(k2, 12, 4)
    w3, b3 = linear(k3, 4, 1)
    return w1, b1, w2, b2, w3, b3


if __name__ == "__main__":
    key = jax.random.PRNGKey(0)
    kx, kp = jax.random.split(key)

    B = 200  # not a multiple of 128 -> exercises the masked partial last block
    x = jax.random.normal(kx, (B, 15), jnp.float32)
    w1, b1, w2, b2, w3, b3 = init_params(kp)

    # Default tile_b collapses to 128 here -> 2 grid steps (pipeline exercised).
    out = mlp_forward(x, w1, b1, w2, b2, w3, b3)
    jax.block_until_ready(out)

    # Pure-f32 JAX reference, matching the PyTorch Net forward exactly.
    h = jnp.maximum(x @ w1.T + b1, 0.0)
    h = jnp.maximum(h @ w2.T + b2, 0.0)
    ref = jax.nn.sigmoid(h @ w3.T + b3)                       # (B, 1)

    assert out.shape == (B, 1)
    err = float(jnp.max(jnp.abs(out - ref)))
    assert jnp.allclose(out, ref, atol=1e-2, rtol=1e-2), err  # bf16 layer-1 quant << 1e-2
    print("KERNEL_OK")
</pallas_src>

<mosaic_0001>
module attributes {stable_mosaic.version = 11 : i64} {
  func.func @_mlp_kernel(%arg0: i32, %arg1: memref<128x15xf32, #tpu.memory_space<vmem>>, %arg2: memref<12x15xbf16, #tpu.memory_space<vmem>>, %arg3: memref<12x1xf32, #tpu.memory_space<vmem>>, %arg4: memref<4x12xf32, #tpu.memory_space<vmem>>, %arg5: memref<4x1xf32, #tpu.memory_space<vmem>>, %arg6: memref<1x4xf32, #tpu.memory_space<vmem>>, %arg7: memref<1x1xf32, #tpu.memory_space<vmem>>, %arg8: memref<1x128xf32, #tpu.memory_space<vmem>>) attributes {dimension_semantics = [#tpu.dimension_semantics<parallel>], iteration_bounds = array<i64: 2>, scalar_prefetch = 0 : i64, scratch_operands = 0 : i64, tpu.core_type = #tpu.core_type<tc>, window_params = [{transform_indices = @transform_0, window_bounds = array<i64: 128, 15>}, {pipeline_mode = #tpu.pipeline_mode<synchronous>, transform_indices = @transform_1, window_bounds = array<i64: 12, 15>}, {pipeline_mode = #tpu.pipeline_mode<synchronous>, transform_indices = @transform_2, window_bounds = array<i64: 12, 1>}, {pipeline_mode = #tpu.pipeline_mode<synchronous>, transform_indices = @transform_3, window_bounds = array<i64: 4, 12>}, {pipeline_mode = #tpu.pipeline_mode<synchronous>, transform_indices = @transform_4, window_bounds = array<i64: 4, 1>}, {pipeline_mode = #tpu.pipeline_mode<synchronous>, transform_indices = @transform_5, window_bounds = array<i64: 1, 4>}, {pipeline_mode = #tpu.pipeline_mode<synchronous>, transform_indices = @transform_6, window_bounds = array<i64: 1, 1>}, {transform_indices = @transform_7, window_bounds = array<i64: 1, 128>}]} {
    %c0 = arith.constant 0 : index
    %c0_0 = arith.constant 0 : index
    %0 = vector.load %arg1[%c0, %c0_0] : memref<128x15xf32, #tpu.memory_space<vmem>>, vector<128x15xf32>
    %1 = arith.truncf %0 : vector<128x15xf32> to vector<128x15xbf16>
    %c0_1 = arith.constant 0 : index
    %c0_2 = arith.constant 0 : index
    %2 = vector.load %arg2[%c0_1, %c0_2] : memref<12x15xbf16, #tpu.memory_space<vmem>>, vector<12x15xbf16>
    %cst = arith.constant dense<0.000000e+00> : vector<12x128xf32>
    %3 = tpu.matmul %2, %1, %cst {dimension_numbers = #tpu.dot_dimension_numbers<[1], [1], [0], [0], [0, 0, 1, 0], [], []>} : vector<12x15xbf16>, vector<128x15xbf16>, vector<12x128xf32> -> vector<12x128xf32>
    %c0_3 = arith.constant 0 : index
    %c0_4 = arith.constant 0 : index
    %4 = vector.load %arg3[%c0_3, %c0_4] : memref<12x1xf32, #tpu.memory_space<vmem>>, vector<12x1xf32>
    %5 = vector.broadcast %4 : vector<12x1xf32> to vector<12x128xf32>
    %6 = arith.addf %3, %5 : vector<12x128xf32>
    %cst_5 = arith.constant 0.000000e+00 : f32
    %7 = vector.broadcast %cst_5 : f32 to vector<12x128xf32>
    %8 = arith.maximumf %6, %7 : vector<12x128xf32>
    %c0_6 = arith.constant 0 : index
    %c0_7 = arith.constant 0 : index
    %9 = vector.load %arg4[%c0_6, %c0_7] : memref<4x12xf32, #tpu.memory_space<vmem>>, vector<4x12xf32>
    %cst_8 = arith.constant dense<0.000000e+00> : vector<4x128xf32>
    %10 = tpu.matmul %9, %8, %cst_8 {dimension_numbers = #tpu.dot_dimension_numbers<[1], [0], [0], [1], [0, 0, 1, 1], [], []>} : vector<4x12xf32>, vector<12x128xf32>, vector<4x128xf32> -> vector<4x128xf32>
    %c0_9 = arith.constant 0 : index
    %c0_10 = arith.constant 0 : index
    %11 = vector.load %arg5[%c0_9, %c0_10] : memref<4x1xf32, #tpu.memory_space<vmem>>, vector<4x1xf32>
    %12 = vector.broadcast %11 : vector<4x1xf32> to vector<4x128xf32>
    %13 = arith.addf %10, %12 : vector<4x128xf32>
    %cst_11 = arith.constant 0.000000e+00 : f32
    %14 = vector.broadcast %cst_11 : f32 to vector<4x128xf32>
    %15 = arith.maximumf %13, %14 : vector<4x128xf32>
    %c0_12 = arith.constant 0 : index
    %c0_13 = arith.constant 0 : index
    %16 = vector.load %arg6[%c0_12, %c0_13] : memref<1x4xf32, #tpu.memory_space<vmem>>, vector<1x4xf32>
    %cst_14 = arith.constant dense<0.000000e+00> : vector<1x128xf32>
    %17 = tpu.matmul %16, %15, %cst_14 {dimension_numbers = #tpu.dot_dimension_numbers<[1], [0], [0], [1], [0, 0, 1, 1], [], []>} : vector<1x4xf32>, vector<4x128xf32>, vector<1x128xf32> -> vector<1x128xf32>
    %c0_15 = arith.constant 0 : index
    %c0_16 = arith.constant 0 : index
    %18 = vector.load %arg7[%c0_15, %c0_16] : memref<1x1xf32, #tpu.memory_space<vmem>>, vector<1x1xf32>
    %19 = vector.broadcast %18 : vector<1x1xf32> to vector<1x128xf32>
    %20 = arith.addf %17, %19 : vector<1x128xf32>
    %cst_17 = arith.constant 5.000000e-01 : f32
    %21 = vector.broadcast %cst_17 : f32 to vector<1x128xf32>
    %22 = arith.mulf %21, %20 : vector<1x128xf32>
    %23 = math.tanh %22 : vector<1x128xf32>
    %cst_18 = arith.constant 5.000000e-01 : f32
    %24 = vector.broadcast %cst_18 : f32 to vector<1x128xf32>
    %25 = arith.mulf %24, %23 : vector<1x128xf32>
    %cst_19 = arith.constant 5.000000e-01 : f32
    %26 = vector.broadcast %cst_19 : f32 to vector<1x128xf32>
    %27 = arith.addf %25, %26 : vector<1x128xf32>
    %c0_20 = arith.constant 0 : index
    %c0_21 = arith.constant 0 : index
    %28 = vector.load %arg8[%c0_20, %c0_21] : memref<1x128xf32, #tpu.memory_space<vmem>>, vector<1x128xf32>
    tpu.vector_store %arg8[%c0_20, %c0_21], %27 {strides = array<i32>} : memref<1x128xf32, #tpu.memory_space<vmem>>, vector<1x128xf32>,
    return
  }
  func.func @transform_0(%arg0: i32) -> (i32, i32) {
    %c0_i32 = arith.constant 0 : i32
    %c0_i32_0 = arith.constant 0 : i32
    return %arg0, %c0_i32 : i32, i32
  }
  func.func @transform_1(%arg0: i32) -> (i32, i32) {
    %c0_i32 = arith.constant 0 : i32
    %c0_i32_0 = arith.constant 0 : i32
    %c0_i32_1 = arith.constant 0 : i32
    return %c0_i32, %c0_i32_0 : i32, i32
  }
  func.func @transform_2(%arg0: i32) -> (i32, i32) {
    %c0_i32 = arith.constant 0 : i32
    %c0_i32_0 = arith.constant 0 : i32
    %c0_i32_1 = arith.constant 0 : i32
    return %c0_i32, %c0_i32_0 : i32, i32
  }
  func.func @transform_3(%arg0: i32) -> (i32, i32) {
    %c0_i32 = arith.constant 0 : i32
    %c0_i32_0 = arith.constant 0 : i32
    %c0_i32_1 = arith.constant 0 : i32
    return %c0_i32, %c0_i32_0 : i32, i32
  }
  func.func @transform_4(%arg0: i32) -> (i32, i32) {
    %c0_i32 = arith.constant 0 : i32
    %c0_i32_0 = arith.constant 0 : i32
    %c0_i32_1 = arith.constant 0 : i32
    return %c0_i32, %c0_i32_0 : i32, i32
  }
  func.func @transform_5(%arg0: i32) -> (i32, i32) {
    %c0_i32 = arith.constant 0 : i32
    %c0_i32_0 = arith.constant 0 : i32
    %c0_i32_1 = arith.constant 0 : i32
    return %c0_i32, %c0_i32_0 : i32, i32
  }
  func.func @transform_6(%arg0: i32) -> (i32, i32) {
    %c0_i32 = arith.constant 0 : i32
    %c0_i32_0 = arith.constant 0 : i32
    %c0_i32_1 = arith.constant 0 : i32
    return %c0_i32, %c0_i32_0 : i32, i32
  }
  func.func @transform_7(%arg0: i32) -> (i32, i32) {
    %c0_i32 = arith.constant 0 : i32
    %c0_i32_0 = arith.constant 0 : i32
    return %c0_i32, %arg0 : i32, i32
  }
}

</mosaic_0001>

<bundles_post_ra>
// kernel: mlp_forward.1
= control target key start
LH: loop header
LB: loop body
LE: loop exit
PB: predicated region body
PF: predicated region fallthrough
CT: control target
= control target key end

     0   :  { %s1029_s0 = inlined_call_operand.vmem [shape: f32[200,15], index: 0, kind: input, shape index: {}]   ;;  %s1030_s1 = inlined_call_operand.vmem [shape: bf16[12,15], index: 1, kind: input, shape index: {}]   ;;  %s1031_s2 = inlined_call_operand.vmem [shape: f32[12,1], index: 2, kind: input, shape index: {}]   ;;  %s1032_s3 = inlined_call_operand.vmem [shape: f32[4,12], index: 3, kind: input, shape index: {}]   ;;  %s1033_s4 = inlined_call_operand.vmem [shape: f32[4,1], index: 4, kind: input, shape index: {}]   ;;  %s1034_s5 = inlined_call_operand.vmem [shape: f32[1,4], index: 5, kind: input, shape index: {}]   ;;  %s1035_s6 = inlined_call_operand.<no memory space> [shape: f32[1,1], index: 6, kind: input, shape index: {}]   ;;  %s1036_s7 = inlined_call_operand.hbm [shape: f32[1,200], index: 7, kind: output, shape index: {}]  }
   0x1   :  { %v12_v0 = vstv %s1035_s6 }
   0x2   :  { %13 = vst [vmem:[#allocation2] sm:$0x1] %v12_v0 }
   0x3   :  { %14 = vsyncpa [#allocation4], 0 }
   0x4   :  { %16 = vsyncpa [#allocation4 + $0x1], 0  ;;  %s879_s26 = smov 0   ;;  %s881_s27 = smov 0  }
   0x5   :  { %s883_s28 = smov 0   ;;  %s885_s29 = smov 0  }
   0x6 LB: > { %s661_s6 = sadd.s32 4294967295, %s830_s29   ;;  %s662_s30 = sadd.s32 4294967294, %s830_s29   ;;  %s830_s29 = sphi %s885_s29, %s1042_s29   ;;  %s826_s28 = sphi %s883_s28, %s1041_s28   ;;  %s822_s27 = sphi %s881_s27, %s1040_s27   ;;  %s818_s26 = sphi %s879_s26, %s1039_s26  }
   0x7   : > { %s902_s8 = sadd.s32 1, %s830_s29   ;;  %s181_s9 = sadd.s32 1, %s826_s28 }
   0x8   : > { %s178_s10 = ssub.s32 %s830_s29, %s902_s8  ;;  %p191_p0 = scmp.ne.s32.totalorder %s826_s28, %s822_s27 }
   0x9   : > { %p179_p1 = scmp.eq.s32.totalorder %s178_s10, 0  ;;  %p192_p2 = scmp.eq.s32.totalorder %s661_s6, 1 }
   0xa   : > { %p197_p3 = scmp.ne.s32.totalorder %s822_s27, %s818_s26  ;;  %p198_p4 = scmp.eq.s32.totalorder %s662_s30, 1 }
   0xb   : > { %s912_s11 = scalar_select %p179_p1, %s826_s28, %s181_s9  }
   0xc   : > { %p914_p5 = por %p192_p2, %p191_p0  ;;  %p918_p6 = por %p198_p4, %p197_p3 }
   0xd   : > { %p665_p7 = scmp.ge.s32.totalorder %s830_s29, 1  ;;  %p251_p8 = scmp.lt.s32.totalorder %s830_s29, 3 }
   0xf   : > { %p252_p9 = pnand %p665_p7, %p251_p8 }
  0x10   : > { %s924_s14 = sshll.u32 (!%p252_p9), %s661_s6, 4  ;;  %s835_s25 = smov (!%p252_p9), [#allocation3]  }
  0x11   : > { %255 = sbr.rel (%p252_p9) target bundleno = 723 (0x2d3), region = 48  ;;  %p291_p10 = scmp.lt.s32.totalorder (!%p252_p9), %s924_s14, 24 }
  0x12   : > { %s605_s22 = scalar_lea.hbm (!%p252_p9), %s1036_s7, %s924_s14  ;;  %s774_s6 = sshll.u32 (!%p252_p9), %s835_s25, 4  ;;  %s775_s6 = int_to_ptr.vmem [resolvable:$false] %s774_s6 }
  0x13   : > { %s776_s30 = scalar_lea.vmem (!%p252_p9), %s775_s6, 32 }
  0x16   : > { %v832_v1 = vmov 0.0   ;;  %vm833_vm0 = vmmov 0   ;;  %v834_v2 = vmov 0   ;;  %v328_v3 = vld [vmem:[%s1031_s2 + $0x8] sm:$0xf]  ;;  %s292_s17 = scalar_select %p291_p10, %s924_s14, 24  ;;  %v508_v57 = vlaneseq }
  0x17   : > { %691 = vmatprep.subr.bf16.mxu0 %v832_v1  ;;  %707 = vmatprep.mubr.msk.bf16.mxu0 %vm833_vm0, %v832_v1  ;;  %v327_v4 = vld [vmem:[%s1031_s2] sm:$0xff]  ;;  %vm344_vm1 = vcmask 121856   ;;  %vm426_vm2 = vcmask 1043456   ;;  %vm422_vm3 = vcmask 97280   ;;  %vm512_vm4 = vcmask 31744  }
  0x18   : > { %765 = vset.pattern.permute.xlu0 %v834_v2  ;;  %711 = vmatprep.subr.mxu1 %v832_v1  ;;  %s667_s20 = sshll.u32 %s292_s17, 3  ;;  %v767_v37 = vld [vmem:[%s1030_s1] sm:$0x3f]   ;;  %v509_v58 = vshrl.u32 %v508_v57, 7  ;;  %s284_s17 = sand.u32 1, %s822_s27  }
  0x19   : > { %336 = vperm.xlu0 %765, %v328_v3   ;;  %715 = vmatprep.mubr.msk.f32.mxu1 %vm833_vm0, %v832_v1  ;;  %s943_s23 = scalar_lea.vmem %s1029_s0, %s667_s20  ;;  %v416_v38 = vld [vmem:[%s1033_s4] sm:$0xf]  ;;  %s285_s18 = scalar_lea.vmem [#allocation3], %s284_s17 }
  0x1a   : > { %766 = vset.pattern.permute.xlu1 %v834_v2  ;;  %v315_v5 = vld [vmem:[%s943_s23 + $0x70] sm:$0xff]  ;;  %v316_v6 = vld [vmem:[%s943_s23 + $0x78] sm:$0xff]  ;;  %v313_v8 = vld [vmem:[%s943_s23 + $0x60] sm:$0xff]  ;;  %v510_v59 = vsub.s32 0, %v509_v58  ;;  %s607_s19 = sshll.u32 %s285_s18, 4  ;;  %s608_s19 = int_to_ptr.vmem [resolvable:$true] %s607_s19 }
  0x1b   : > { %v324_v7 = vpack.c.bf16 %v316_v6, %v315_v5  ;;  %v314_v9 = vld [vmem:[%s943_s23 + $0x68] sm:$0xff]  ;;  %v311_v13 = vld [vmem:[%s943_s23 + $0x50] sm:$0xff]  ;;  %v312_v14 = vld [vmem:[%s943_s23 + $0x58] sm:$0xff]  ;;  %419 = vperm.xlu1 %766, %v416_v38   ;;  %s770_s24 = scalar_lea.vmem %s608_s19, 16  ;;  %p777_p0 = scmp.lt.s32.totalorder %s608_s19, %s775_s6 }
  0x1c   : > { %v323_v11 = vpack.c.bf16 %v314_v9, %v313_v8  ;;  %v322_v15 = vpack.c.bf16 %v312_v14, %v311_v13  ;;  %v309_v17 = vld [vmem:[%s943_s23 + $0x40] sm:$0xff]  ;;  %v310_v18 = vld [vmem:[%s943_s23 + $0x48] sm:$0xff]  ;;  %v307_v21 = vld [vmem:[%s943_s23 + $0x30] sm:$0xff]  ;;  %p771_p11 = scmp.ne.s32.totalorder %s608_s19, %s770_s24  ;;  %p778_p1 = scmp.lt.s32.totalorder %s776_s30, %s770_s24 }
  0x1d   : > { %331 = vperm.xlu0 %765, %v327_v4   ;;  %v370_v10 = vsel %vm344_vm1, %v324_v7, 0  ;;  %v321_v19 = vpack.c.bf16 %v310_v18, %v309_v17  ;;  %v308_v22 = vld [vmem:[%s943_s23 + $0x38] sm:$0xff]  ;;  %v305_v25 = vld [vmem:[%s943_s23 + $0x20] sm:$0xff]  ;;  %v306_v26 = vld [vmem:[%s943_s23 + $0x28] sm:$0xff] }
  0x1e   : > { %692 = vmatpush3.bf16.xpose.msra.mxu0 %v370_v10  ;;  %v367_v12 = vsel %vm344_vm1, %v323_v11, 0  ;;  %v364_v16 = vsel %vm344_vm1, %v322_v15, 0  ;;  %v320_v23 = vpack.c.bf16 %v308_v22, %v307_v21  ;;  %v319_v27 = vpack.c.bf16 %v306_v26, %v305_v25  ;;  %v303_v29 = vld [vmem:[%s943_s23 + $0x10] sm:$0xff]  ;;  %v304_v30 = vld [vmem:[%s943_s23 + $0x18] sm:$0xff]  ;;  %v301_v33 = vld [vmem:[%s943_s23] sm:$0xff]  ;;  %p772_p12 = pnand %p771_p11, %p914_p5  ;;  %p779_p2 = por %p778_p1, %p777_p0 }
  0x1f   : > { %693 = vmatprep.subr.bf16.mxu0 %v832_v1  ;;  %v361_v20 = vsel %vm344_vm1, %v321_v19, 0  ;;  %v318_v31 = vpack.c.bf16 %v304_v30, %v303_v29  ;;  %v302_v34 = vld [vmem:[%s943_s23 + $0x8] sm:$0xff]  ;;  %v502_v39 = vld [vmem:[#allocation2] sm:$0x1]  ;;  %s595_s23 = scalar_lea.sflag [#allocation4], %s284_s17 }
  0x20   : > { %v358_v24 = vsel %vm344_vm1, %v320_v23, 0  ;;  %v355_v28 = vsel %vm344_vm1, %v319_v27, 0  ;;  %v317_v35 = vpack.c.bf16 %v302_v34, %v301_v33  ;;  %505 = vperm.xlu1 %766, %v502_v39   ;;  %v415_v50 = vld [vmem:[%s1032_s3] sm:$0xf]  ;;  %p773_p13 = pneg %p772_p12 }
  0x21   : > { %v352_v32 = vsel %vm344_vm1, %v318_v31, 0  ;;  %v501_v56 = vld [vmem:[%s1034_s5] sm:$0x1] }
  0x22   : > { %v349_v36 = vsel %vm344_vm1, %v317_v35, 0  ;;  %p780_p3 = pnand %p779_p2, %p773_p13 }
  0x26   : > { %694 = vmatpush3.bf16.xpose.msra.mxu0 %v367_v12 }
  0x27   : > { %695 = vmatprep.subr.bf16.mxu0 %v832_v1 }
  0x2e   : > { %696 = vmatpush3.bf16.xpose.msra.mxu0 %v364_v16 }
  0x2f   : > { %697 = vmatprep.subr.bf16.mxu0 %v832_v1 }
  0x36   : > { %698 = vmatpush3.bf16.xpose.msra.mxu0 %v361_v20 }
  0x37   : > { %699 = vmatprep.subr.bf16.mxu0 %v832_v1 }
  0x3e   : > { %700 = vmatpush3.bf16.xpose.msra.mxu0 %v358_v24 }
  0x3f   : > { %701 = vmatprep.subr.bf16.mxu0 %v832_v1 }
  0x46   : > { %702 = vmatpush3.bf16.xpose.msra.mxu0 %v355_v28 }
  0x47   : > { %703 = vmatprep.subr.bf16.mxu0 %v832_v1 }
  0x4e   : > { %704 = vmatpush3.bf16.xpose.msra.mxu0 %v352_v32 }
  0x4f   : > { %705 = vmatprep.subr.bf16.mxu0 %v832_v1 }
  0x56   : > { %706 = vmatpush3.bf16.xpose.msra.mxu0 %v349_v36 }
  0x5d   : > { %708 = vmatmul.mubr.msk.bf16.vlgmr.msra.gmra.mxu0 %vm344_vm1, %v767_v37 }
  0x94   : > { %v337_v40 = vpop.permute.xlu0 %336 }
  0x96   : > { %v420_v51 = vpop.permute.xlu1 %419 }
  0x98   : > { %v332_v42 = vpop.permute.xlu0 %331 }
  0x9b   : > { %v506_v60 = vpop.permute.xlu1 %505 }
  0x9c   : > { %v511_v61 = vrot.slane %v506_v60, %v510_v59 }
 0x11d   : > { %v406_v41 = vpop.f32.mrf.mxu0 }
 0x11e   : > { %v407_v45 = vadd.f32 %v406_v41, %v332_v42 }
 0x11f   : > { %v709_v43 = vpop.f32.mrf.mxu0 }
 0x120   : > { %v413_v49 = vmax.f32 %v407_v45, 0.0 }
 0x121   : > { %v409_v44 = vpop.f32.mrf.mxu0 }
 0x122   : > { %v410_v46 = vadd.f32 %v409_v44, %v337_v40 }
 0x123   : > { %v710_v47 = vpop.f32.mrf.mxu0 }
 0x124   : > { %v414_v48 = vmax.f32 %v410_v46, 0.0 }
 0x126   : > { %712 = vmatpush3.msk.msra.mxu1 %vm426_vm2, %v414_v48 }
 0x127   : > { %713 = vmatprep.subr.mxu1 %v832_v1 }
 0x128   : > { %714 = vmatpush3.msra.mxu1 %v413_v49 }
 0x129   : > { %716 = vmatmul.mubr.msk.f32.vlgmr.msra.gmra.mxu1 %vm422_vm3, %v415_v50  ;;  %718 = vmatprep.subr.mxu1 %v832_v1 }
 0x12a   : > { %720 = vmatprep.mubr.msk.f32.mxu1 %vm833_vm0, %v832_v1 }
 0x1e9   : > { %v496_v52 = vpop.f32.mrf.mxu1 }
 0x1ea   : > { %v497_v53 = vadd.f32 %v496_v52, %v420_v51 }
 0x1eb   : > { %v717_v54 = vpop.f32.mrf.mxu1 }
 0x1ec   : > { %v500_v55 = vmax.f32 %v497_v53, 0.0 }
 0x1ee   : > { %719 = vmatpush3.msk.msra.mxu1 %vm426_vm2, %v500_v55 }
 0x1ef   : > { %721 = vmatmul.mubr.msk.f32.vlgmr.msra.gmra.mxu1 %vm512_vm4, %v501_v56 }
 0x2af   : > { %v585_v62 = vpop.f32.mrf.mxu1 }
 0x2b0   : > { %v586_v63 = vadd.f32 %v585_v62, %v511_v61 }
 0x2b1   : > { %v722_v0 = vpop.f32.mrf.mxu1 }
 0x2b2   : > { %v589_v1 = vmul.f32 0.5, %v586_v63 }
 0x2b4   : > { %768 = vtanh.f32 %v589_v1 }
 0x2c1   : > { %v769_v2 = vpop.eup %768 }
 0x2c2   : > { %v591_v3 = vmul.f32 0.5, %v769_v2 }
 0x2c4   : > { %v592_v4 = vadd.f32 0.5, %v591_v3 }
 0x2c6   : > { %593 = vst [vmem:[%s285_s18] sm:$0x1] %v592_v4 }
 0x2c7   : > { %783 = shalt.err (!%p780_p3)
}
 0x2c8   : > { %s784_s9 = scalar_lea.hbm %s605_s22, 16  ;;  %s788_s15 = scalar_lea.hbm %s1036_s7, 32 }
 0x2c9   : > { %p785_p4 = scmp.ne.s32.totalorder %s605_s22, %s784_s9  ;;  %p789_p9 = scmp.lt.s32.totalorder %s605_s22, %s1036_s7 }
 0x2ca   : > { %p790_p10 = scmp.lt.s32.totalorder %s788_s15, %s784_s9 }
 0x2cb   : > { %p786_p7 = pnand %p785_p4, %p914_p5 }
 0x2cc   : > { %p791_p11 = por %p790_p10, %p789_p9 }
 0x2cd   : > { %p787_p8 = pneg %p786_p7 }
 0x2cf   : > { %p792_p12 = pnand %p791_p11, %p787_p8 }
 0x2d1   : > { %795 = shalt.err (!%p792_p12)
}
 0x2d2   : > { %723 = dma.vmem_to_hbm [thread:$0]  (%p914_p5), %s608_s19, 16, %s605_s22, %s595_s23  }
 0x2d3 PF: > { %p729_p13 = scmp.ge.s32.totalorder %s830_s29, 2  ;;  %s619_s18 = sand.u32 1, %s818_s26  }
 0x2d4   : > { %s620_s20 = scalar_lea.sflag [#allocation4], %s619_s18 }
 0x2d5   : > { %p726_p0 = pnand %p729_p13, %p918_p6 }
 0x2d7   : > { %p727_p1 = pneg %p726_p0 }
 0x2d9   : > { %813 = dma.done.wait (%p727_p1), %s620_s20, 16  }
 0x2da   : > { %815 = vsyncadd (%p727_p1), %s620_s20, 4294967280  ;;  %p19_p2 = scmp.ge.s32.totalorder %s902_s8, 4   ;;  %s1039_s26 = smov %s822_s27 }
 0x2db   : > { %s1040_s27 = smov %s826_s28  ;;  %s1041_s28 = smov %s912_s11 }
 0x2dc   : > { %s1042_s29 = smov %s902_s8  ;;  %21 = sbr.rel (!%p19_p2) target bundleno = 6 (0x6), region = 83 }
 0x2e1   :  { %624 = vsyncpa [#allocation4], 1 }
 0x2e2   :  { %626 = vsyncpa [#allocation4 + $0x1], 1 }

</bundles_post_ra>
